<compile_context>
chip_gen: v6e
topology: v6e:2x2x1
jax: 0.10.0
libtpu: 0.0.40
codegen_flags: <defaults>
</compile_context>

<pallas_src>
import functools

import jax
import jax.numpy as jnp
from jax.experimental import pallas as pl
from jax.experimental.pallas import tpu as pltpu
from jax.scipy.linalg import block_diag

NEG_SLOPE = 0.01        # nn.LeakyReLU default (Conv/Dense activations)
GAT_NEG_SLOPE = 0.2     # GATConv internal LeakyReLU
HEADS = 16              # N_Graph_Heads
NODE_CH = 5             # in_node_channels (= per-head out channels)
EDGE_CH = 2             # in_edge_channels
N_KERNELS = 16
KSIZE = 10
N_DENSE = 128
POOL_SIZE = 500
HC = HEADS * NODE_CH    # 80


def _leaky(x, slope=NEG_SLOPE):
    return jnp.where(x >= 0, x, slope * x)


# ---------------------------------------------------------------------------
# Pallas kernel 1: fused (X @ W + b) + optional activation, full-array blocks.
# Used for the GAT node transform (one matmul per layer) and the combined
# edge-attention projection of all four GAT layers.
# ---------------------------------------------------------------------------
def _linear_kernel(x_ref, w_ref, b_ref, o_ref, *, act):
    y = jnp.dot(x_ref[...], w_ref[...],
                preferred_element_type=jnp.float32) + b_ref[...]
    if act == "leaky_relu":
        y = _leaky(y)
    o_ref[...] = y


def linear_act(x, w, b, act="none"):
    x = jnp.asarray(x, jnp.float32)
    w = jnp.asarray(w, jnp.float32)
    b = jnp.reshape(jnp.asarray(b, jnp.float32), (1, -1))
    M, K = x.shape
    N = w.shape[1]
    return pl.pallas_call(
        functools.partial(_linear_kernel, act=act),
        out_shape=jax.ShapeDtypeStruct((M, N), jnp.float32),
        grid=(1,),
        in_specs=[pl.BlockSpec((M, K), lambda i: (0, 0)),
                  pl.BlockSpec((K, N), lambda i: (0, 0)),
                  pl.BlockSpec((1, N), lambda i: (0, 0))],
        out_specs=pl.BlockSpec((M, N), lambda i: (0, 0)),
        compiler_params=pltpu.CompilerParams(dimension_semantics=("arbitrary",)),
    )(x, w, b)


# ---------------------------------------------------------------------------
# Pallas kernel 2: Conv1d(NCW, stride=2, padding=1) + LeakyReLU, with optional
# fused MaxPool1d / AvgPool1d epilogue.  Grid = batch ("parallel").
# Patch construction happens entirely in VMEM via tap-window slices of the
# even/odd phases of the padded input (no im2col in HBM).
# ---------------------------------------------------------------------------
def _conv_math(xe, xo, w_ref, b_ref, *, ksize, lout):
    cout = b_ref.shape[0]
    acc = jnp.zeros((cout, lout), jnp.float32)
    for k in range(ksize):
        phase = xe if (k % 2 == 0) else xo
        win = phase[:, k // 2: k // 2 + lout]            # (Cin, Lout), contiguous
        acc = acc + jnp.dot(w_ref[k], win, preferred_element_type=jnp.float32)
    return _leaky(acc + b_ref[...])                      # (Cout, Lout), f32


def _conv_kernel(xe_ref, xo_ref, w_ref, b_ref, o_ref, *, ksize, lout):
    o_ref[0] = _conv_math(xe_ref[0], xo_ref[0], w_ref, b_ref,
                          ksize=ksize, lout=lout)


def _conv_pool_kernel(xe_ref, xo_ref, w_ref, b_ref, mx_ref, av_ref, *,
                      ksize, lout, pool_win):
    y = _conv_math(xe_ref[0], xo_ref[0], w_ref, b_ref, ksize=ksize, lout=lout)
    n_win = lout // pool_win
    mx, av = [], []
    for wi in range(n_win):
        seg = y[:, wi * pool_win:(wi + 1) * pool_win]
        mx.append(jnp.max(seg, axis=-1, keepdims=True))
        av.append(jnp.mean(seg, axis=-1, keepdims=True))
    mx_ref[0] = jnp.concatenate(mx, axis=-1)
    av_ref[0] = jnp.concatenate(av, axis=-1)


def conv1d_leaky(x, w, b, *, stride=2, padding=1, pool_win=None):
    bsz, cin, L = x.shape
    cout, _, ksize = w.shape
    assert stride == 2
    lout = (L + 2 * padding - ksize) // stride + 1
    xp = jnp.pad(x, ((0, 0), (0, 0), (padding, padding))).astype(jnp.bfloat16)
    # Even/odd phase split: output j, tap k reads padded index 2j+k, which is
    # element j + k//2 of the even (k even) or odd (k odd) phase -> contiguous.
    xe = xp[:, :, 0::2]
    xo = xp[:, :, 1::2]
    wk = jnp.transpose(w, (2, 0, 1)).astype(jnp.bfloat16)        # (K, Cout, Cin)
    bc = jnp.reshape(b, (cout, 1)).astype(jnp.float32)
    le, lo = xe.shape[-1], xo.shape[-1]
    in_specs = [pl.BlockSpec((1, cin, le), lambda i: (i, 0, 0)),
                pl.BlockSpec((1, cin, lo), lambda i: (i, 0, 0)),
                pl.BlockSpec((ksize, cout, cin), lambda i: (0, 0, 0)),
                pl.BlockSpec((cout, 1), lambda i: (0, 0))]
    cparams = pltpu.CompilerParams(dimension_semantics=("parallel",))
    if pool_win is None:
        return pl.pallas_call(
            functools.partial(_conv_kernel, ksize=ksize, lout=lout),
            out_shape=jax.ShapeDtypeStruct((bsz, cout, lout), jnp.float32),
            grid=(bsz,),
            in_specs=in_specs,
            out_specs=pl.BlockSpec((1, cout, lout), lambda i: (i, 0, 0)),
            compiler_params=cparams,
        )(xe, xo, wk, bc)
    n_win = lout // pool_win
    return pl.pallas_call(
        functools.partial(_conv_pool_kernel, ksize=ksize, lout=lout,
                          pool_win=pool_win),
        out_shape=(jax.ShapeDtypeStruct((bsz, cout, n_win), jnp.float32),
                   jax.ShapeDtypeStruct((bsz, cout, n_win), jnp.float32)),
        grid=(bsz,),
        in_specs=in_specs,
        out_specs=(pl.BlockSpec((1, cout, n_win), lambda i: (i, 0, 0)),
                   pl.BlockSpec((1, cout, n_win), lambda i: (i, 0, 0))),
        compiler_params=cparams,
    )(xe, xo, wk, bc)


# ---------------------------------------------------------------------------
# Pallas kernel 3: the whole dense trunk + 3 output heads fused in one call.
# Head layer 1/2 are packed column-wise / block-diagonally into single 384-wide
# matmuls; activations never leave VMEM.
# ---------------------------------------------------------------------------
def _dense_head_kernel(x_ref, w1, b1, w2, b2, w3, b3,
                       wh1, bh1, wh2, bh2, wh3, bh3, o_ref):
    def lin(h, w_ref, b_ref):
        return jnp.dot(h, w_ref[...], preferred_element_type=jnp.float32) + b_ref[...]

    h = _leaky(lin(x_ref[...], w1, b1))          # Dense1
    h = _leaky(lin(h, w2, b2))                   # Dense2
    h = _leaky(lin(h, w3, b3))                   # Dense3
    y = _leaky(lin(h, wh1, bh1))                 # Chi01 | Rp1 | T01  -> (B, 384)
    y = _leaky(lin(y, wh2, bh2))                 # Chi02 | Rp2 | T02  (block-diag)
    y = lin(y, wh3, bh3)                         # Chi03 | Rp3 | T03  -> (B, 3)
    col = jax.lax.broadcasted_iota(jnp.int32, y.shape, 1)
    o_ref[...] = jnp.where(col == 0, jnp.tanh(y), y)   # tanh only on the Chi0 column


def dense_heads(x, p):
    wh1 = jnp.concatenate([p["chi1_w"], p["rp1_w"], p["t01_w"]], axis=1)   # (128,384)
    bh1 = jnp.concatenate([p["chi1_b"], p["rp1_b"], p["t01_b"]])
    wh2 = block_diag(p["chi2_w"], p["rp2_w"], p["t02_w"])                  # (384,384)
    bh2 = jnp.concatenate([p["chi2_b"], p["rp2_b"], p["t02_b"]])
    wh3 = block_diag(p["chi3_w"], p["rp3_w"], p["t03_w"])                  # (384,3)
    bh3 = jnp.concatenate([p["chi3_b"], p["rp3_b"], p["t03_b"]])

    def r(b):
        return jnp.reshape(b, (1, -1)).astype(jnp.float32)

    args = [x.astype(jnp.float32),
            p["d1_w"], r(p["d1_b"]), p["d2_w"], r(p["d2_b"]),
            p["d3_w"], r(p["d3_b"]),
            wh1, r(bh1), wh2, r(bh2), wh3, r(bh3)]
    bsz = x.shape[0]
    return pl.pallas_call(
        _dense_head_kernel,
        out_shape=jax.ShapeDtypeStruct((bsz, 3), jnp.float32),
        grid=(1,),
        in_specs=[pl.BlockSpec(a.shape, lambda i: (0, 0)) for a in args],
        out_specs=pl.BlockSpec((bsz, 3), lambda i: (0, 0)),
        compiler_params=pltpu.CompilerParams(dimension_semantics=("arbitrary",)),
    )(*args)


# ---------------------------------------------------------------------------
# GATConv(in, 5, heads=16, concat=True, edge_dim=2, fill_value=0) forward.
# att_* vectors are folded into the weights so the whole linear part of a layer
# is one Pallas matmul; the per-destination softmax / aggregation remains in
# segment ops (data-dependent scatter).
# ---------------------------------------------------------------------------
def pack_gat(p):
    in_ch = p["W"].shape[0]
    w3 = p["W"].reshape(in_ch, HEADS, NODE_CH)
    w_asrc = jnp.einsum("ihc,hc->ih", w3, p["att_src"][0])     # (in, 16)
    w_adst = jnp.einsum("ihc,hc->ih", w3, p["att_dst"][0])     # (in, 16)
    we3 = p["W_edge"].reshape(EDGE_CH, HEADS, NODE_CH)
    w_eatt = jnp.einsum("ihc,hc->ih", we3, p["att_edge"][0])   # (2, 16)
    return dict(W_aug=jnp.concatenate([p["W"], w_asrc, w_adst], axis=1),  # (in,112)
                W_eatt=w_eatt, bias=p["bias"])


def gat_conv(x, src, dst, a_edge_real, gp):
    n = x.shape[0]
    aug = linear_act(x, gp["W_aug"], jnp.zeros((HC + 2 * HEADS,), jnp.float32))
    xl = aug[:, :HC].reshape(n, HEADS, NODE_CH)
    a_src = aug[:, HC:HC + HEADS]
    a_dst = aug[:, HC + HEADS:]
    # add_self_loops=True with fill_value=0 -> self-loop edge_attr is 0 => a_edge = 0.
    loop = jnp.arange(n, dtype=src.dtype)
    src2 = jnp.concatenate([src, loop])
    dst2 = jnp.concatenate([dst, loop])
    a_edge = jnp.concatenate([a_edge_real, jnp.zeros((n, HEADS), jnp.float32)], axis=0)
    alpha = _leaky(a_src[src2] + a_dst[dst2] + a_edge, GAT_NEG_SLOPE)
    # Softmax over the incoming edges of each destination node (per head).
    # TODO(synk): for large graphs replace the segment_* passes with a sorted,
    # offset-prefetched Pallas kernel (PrefetchScalarGridSpec) doing it in one pass.
    amax = jax.ops.segment_max(alpha, dst2, num_segments=n)
    alpha = jnp.exp(alpha - amax[dst2])
    denom = jax.ops.segment_sum(alpha, dst2, num_segments=n)
    alpha = alpha / (denom[dst2] + 1e-16)
    msg = (xl[src2] * alpha[:, :, None]).reshape(-1, HC)
    out = jax.ops.segment_sum(msg, dst2, num_segments=n)
    return out + gp["bias"]


# ---------------------------------------------------------------------------
# max_pool_x / avg_pool_x(cluster=Timing, batch, size=500) semantics:
# PyG scatters by `cluster` into batch_size*size bins; empty bins are 0.
# ---------------------------------------------------------------------------
def timing_pool(x, timing, num_segments):
    counts = jax.ops.segment_sum(jnp.ones_like(timing, jnp.float32), timing,
                                 num_segments=num_segments)[:, None]
    smax = jax.ops.segment_max(x, timing, num_segments=num_segments)
    smax = jnp.where(counts > 0, smax, 0.0)
    ssum = jax.ops.segment_sum(x, timing, num_segments=num_segments)
    savg = jnp.where(counts > 0, ssum / jnp.maximum(counts, 1.0), 0.0)
    return smax, savg


# ---------------------------------------------------------------------------
# Full forward pass of Model_Geom_Graph_C.
# ---------------------------------------------------------------------------
def model_forward(graphs, aux_data, params):
    del aux_data  # AuxData is accepted but unused by the reference forward()
    all_nodes, all_edges, all_edgev, batching = [], [], [], []
    total = 0
    for bi, (nodes, edges, edgev) in enumerate(graphs):
        all_nodes.append(nodes)
        all_edges.append(edges + total)
        all_edgev.append(edgev)
        batching.append(jnp.full((nodes.shape[0],), bi, jnp.int32))
        total += nodes.shape[0]
    all_nodes = jnp.concatenate(all_nodes, axis=0)
    all_edges = jnp.concatenate(all_edges, axis=0).T           # (2, E): [src; dst]
    all_edgev = jnp.concatenate(all_edgev, axis=0)
    _batching = jnp.concatenate(batching, axis=0)              # only used for batch size
    timing = all_nodes[:, 2].astype(jnp.int32)
    src, dst = all_edges[0], all_edges[1]

    gps = [pack_gat(params[k]) for k in ("graph1", "graph2", "graph3", "graphS")]
    # One Pallas matmul computes the edge-attention scalars of all 4 GAT layers.
    we_all = jnp.concatenate([g["W_eatt"] for g in gps], axis=1)          # (2, 64)
    a_edge_all = linear_act(all_edgev, we_all, jnp.zeros((4 * HEADS,), jnp.float32))

    out = gat_conv(all_nodes, src, dst, a_edge_all[:, 0:HEADS], gps[0])
    out = gat_conv(out, src, dst, a_edge_all[:, HEADS:2 * HEADS], gps[1])
    out = gat_conv(out, src, dst, a_edge_all[:, 2 * HEADS:3 * HEADS], gps[2])

    mask = all_edgev[:, 0] > 1
    out = gat_conv(out, src[mask], dst[mask],
                   a_edge_all[:, 3 * HEADS:4 * HEADS][mask], gps[3])

    bsz = len(graphs)
    smax, savg = timing_pool(out, timing, bsz * POOL_SIZE)
    feat = out.shape[1]                                        # 80
    max_out = smax.reshape(-1, feat, POOL_SIZE)                # faithful .view(-1,F,500)
    avg_out = savg.reshape(-1, feat, POOL_SIZE)
    x = jnp.concatenate([max_out, avg_out], axis=1)            # (B, 160, 500)

    x = conv1d_leaky(x, params["conv1_w"], params["conv1_b"])                 # (B,16,247)
    x = conv1d_leaky(x, params["conv2_w"], params["conv2_b"])                 # (B,16,120)
    mx, av = conv1d_leaky(x, params["conv3_w"], params["conv3_b"],
                          pool_win=10)                                        # (B,16,5) x2
    x = jnp.concatenate([mx, av], axis=1).reshape(bsz, -1)                    # (B, 160)

    return dense_heads(x, params)                                             # (B, 3)


# ---------------------------------------------------------------------------
# Deterministic synthetic parameters (shapes from the module __init__).
# ---------------------------------------------------------------------------
def init_params(key):
    keys = iter(jax.random.split(key, 64))

    def unif(shape, fan_in):
        bound = 1.0 / float(fan_in) ** 0.5
        return jax.random.uniform(next(keys), shape, jnp.float32, -bound, bound)

    def gat_params(in_ch):
        return dict(
            W=unif((in_ch, HEADS * NODE_CH), in_ch),
            W_edge=unif((EDGE_CH, HEADS * NODE_CH), EDGE_CH),
            att_src=unif((1, HEADS, NODE_CH), NODE_CH),
            att_dst=unif((1, HEADS, NODE_CH), NODE_CH),
            att_edge=unif((1, HEADS, NODE_CH), NODE_CH),
            bias=jnp.zeros((HEADS * NODE_CH,), jnp.float32),
        )

    p = dict(
        graph1=gat_params(NODE_CH),
        graph2=gat_params(HEADS * NODE_CH),
        graph3=gat_params(HEADS * NODE_CH),
        graphS=gat_params(HEADS * NODE_CH),
    )
    cin1 = 2 * HEADS * NODE_CH
    p["conv1_w"] = unif((N_KERNELS, cin1, KSIZE), cin1 * KSIZE)
    p["conv1_b"] = unif((N_KERNELS,), cin1 * KSIZE)
    p["conv2_w"] = unif((N_KERNELS, N_KERNELS, KSIZE), N_KERNELS * KSIZE)
    p["conv2_b"] = unif((N_KERNELS,), N_KERNELS * KSIZE)
    p["conv3_w"] = unif((N_KERNELS, N_KERNELS, KSIZE), N_KERNELS * KSIZE)
    p["conv3_b"] = unif((N_KERNELS,), N_KERNELS * KSIZE)

    # L after the conv stack = 57; MaxPool1d(10)/AvgPool1d(10) -> 5; flattened = 160.
    flat = 2 * N_KERNELS * 5
    # TODO(synk): the reference __init__ builds Dense1 = Linear(L_out=57, 128) (and
    # references an undefined `Lout`), which cannot consume the flattened (B, 160)
    # tensor produced in forward(); Dense1 here takes the flattened size so the
    # forward pass is runnable.
    dense_dims = dict(d1=(flat, N_DENSE), d2=(N_DENSE, N_DENSE), d3=(N_DENSE, N_DENSE),
                      chi1=(N_DENSE, N_DENSE), chi2=(N_DENSE, N_DENSE), chi3=(N_DENSE, 1),
                      rp1=(N_DENSE, N_DENSE), rp2=(N_DENSE, N_DENSE), rp3=(N_DENSE, 1),
                      t01=(N_DENSE, N_DENSE), t02=(N_DENSE, N_DENSE), t03=(N_DENSE, 1))
    for name, (i, o) in dense_dims.items():
        p[name + "_w"] = unif((i, o), i)
        p[name + "_b"] = unif((o,), i)
    return p


if __name__ == "__main__":
    root = jax.random.PRNGKey(0)
    pkey, dkey = jax.random.split(root)
    params = init_params(pkey)

    # Two small synthetic graphs: (Nodes (n, 5), Edges (e, 2) [src, dst], EdgeV (e, 2)).
    graphs = []
    n_nodes = [10, 12]
    n_edges = [14, 16]
    dkeys = jax.random.split(dkey, 5 * len(n_nodes))
    ki = 0
    for b in range(len(n_nodes)):
        n, e = n_nodes[b], n_edges[b]
        feat = jax.random.normal(dkeys[ki], (n, NODE_CH), jnp.float32); ki += 1
        timing = jax.random.randint(dkeys[ki], (n,), 0, POOL_SIZE); ki += 1
        feat = feat.at[:, 2].set(timing.astype(jnp.float32))   # column 2 = timing bin
        s = jax.random.randint(dkeys[ki], (e,), 0, n); ki += 1
        d = (s + 1 + jax.random.randint(dkeys[ki], (e,), 0, n - 1)) % n; ki += 1  # no self loops
        edges = jnp.stack([s, d], axis=1).astype(jnp.int32)
        edgev = jax.random.uniform(dkeys[ki], (e, EDGE_CH), jnp.float32, 0.0, 3.0); ki += 1
        graphs.append((feat, edges, edgev))

    aux_data = jnp.zeros((len(graphs), 4), jnp.float32)        # unused by forward()

    out = model_forward(graphs, aux_data, params)
    out = jax.block_until_ready(out)
    assert out.shape == (len(graphs), 3), out.shape
    assert bool(jnp.all(jnp.isfinite(out)))
    print("KERNEL_OK")
</pallas_src>

<mosaic_0001>
module attributes {stable_mosaic.version = 11 : i64} {
  func.func @_linear_kernel(%arg0: i32, %arg1: memref<30x2xf32, #tpu.memory_space<vmem>>, %arg2: memref<2x64xf32, #tpu.memory_space<vmem>>, %arg3: memref<1x64xf32, #tpu.memory_space<vmem>>, %arg4: memref<30x64xf32, #tpu.memory_space<vmem>>) attributes {dimension_semantics = [#tpu.dimension_semantics<arbitrary>], iteration_bounds = array<i64: 1>, scalar_prefetch = 0 : i64, scratch_operands = 0 : i64, tpu.core_type = #tpu.core_type<tc>, window_params = [{pipeline_mode = #tpu.pipeline_mode<synchronous>, transform_indices = @transform_0, window_bounds = array<i64: 30, 2>}, {pipeline_mode = #tpu.pipeline_mode<synchronous>, transform_indices = @transform_1, window_bounds = array<i64: 2, 64>}, {pipeline_mode = #tpu.pipeline_mode<synchronous>, transform_indices = @transform_2, window_bounds = array<i64: 1, 64>}, {pipeline_mode = #tpu.pipeline_mode<synchronous>, transform_indices = @transform_3, window_bounds = array<i64: 30, 64>}]} {
    %c0 = arith.constant 0 : index
    %c0_0 = arith.constant 0 : index
    %0 = vector.load %arg1[%c0, %c0_0] : memref<30x2xf32, #tpu.memory_space<vmem>>, vector<30x2xf32>
    %c0_1 = arith.constant 0 : index
    %c0_2 = arith.constant 0 : index
    %1 = vector.load %arg2[%c0_1, %c0_2] : memref<2x64xf32, #tpu.memory_space<vmem>>, vector<2x64xf32>
    %cst = arith.constant dense<0.000000e+00> : vector<30x64xf32>
    %2 = tpu.matmul %0, %1, %cst {dimension_numbers = #tpu.dot_dimension_numbers<[1], [0], [0], [1], [0, 0, 1, 1], [], []>} : vector<30x2xf32>, vector<2x64xf32>, vector<30x64xf32> -> vector<30x64xf32>
    %c0_3 = arith.constant 0 : index
    %c0_4 = arith.constant 0 : index
    %3 = vector.load %arg3[%c0_3, %c0_4] : memref<1x64xf32, #tpu.memory_space<vmem>>, vector<1x64xf32>
    %4 = vector.broadcast %3 : vector<1x64xf32> to vector<30x64xf32>
    %5 = arith.addf %2, %4 : vector<30x64xf32>
    %c0_5 = arith.constant 0 : index
    %c0_6 = arith.constant 0 : index
    %6 = vector.load %arg4[%c0_5, %c0_6] : memref<30x64xf32, #tpu.memory_space<vmem>>, vector<30x64xf32>
    tpu.vector_store %arg4[%c0_5, %c0_6], %5 {strides = array<i32>} : memref<30x64xf32, #tpu.memory_space<vmem>>, vector<30x64xf32>,
    return
  }
  func.func @transform_0(%arg0: i32) -> (i32, i32) {
    %c0_i32 = arith.constant 0 : i32
    %c0_i32_0 = arith.constant 0 : i32
    %c0_i32_1 = arith.constant 0 : i32
    return %c0_i32, %c0_i32_0 : i32, i32
  }
  func.func @transform_1(%arg0: i32) -> (i32, i32) {
    %c0_i32 = arith.constant 0 : i32
    %c0_i32_0 = arith.constant 0 : i32
    %c0_i32_1 = arith.constant 0 : i32
    return %c0_i32, %c0_i32_0 : i32, i32
  }
  func.func @transform_2(%arg0: i32) -> (i32, i32) {
    %c0_i32 = arith.constant 0 : i32
    %c0_i32_0 = arith.constant 0 : i32
    %c0_i32_1 = arith.constant 0 : i32
    return %c0_i32, %c0_i32_0 : i32, i32
  }
  func.func @transform_3(%arg0: i32) -> (i32, i32) {
    %c0_i32 = arith.constant 0 : i32
    %c0_i32_0 = arith.constant 0 : i32
    %c0_i32_1 = arith.constant 0 : i32
    return %c0_i32, %c0_i32_0 : i32, i32
  }
}

</mosaic_0001>

<bundles_post_ra>
// kernel: tpu_custom_call.1
= control target key start
LH: loop header
LB: loop body
LE: loop exit
PB: predicated region body
PF: predicated region fallthrough
CT: control target
= control target key end

     0   :  { %vm40_vm0 = vcmask 1041408   ;;  %vm27_vm1 = vcmask 15360   ;;  %s241_s0 = inlined_call_operand.vmem [shape: f32[30,2], index: 0, kind: input, shape index: {}]   ;;  %s242_s1 = inlined_call_operand.vmem [shape: f32[2,64], index: 1, kind: input, shape index: {}]   ;;  %s243_s2 = inlined_call_operand.vmem [shape: f32[1,64], index: 2, kind: input, shape index: {}]   ;;  %s244_s3 = inlined_call_operand.hbm [shape: f32[30,64], index: 3, kind: output, shape index: {}]  }
   0x1   :  { %v19_v0 = vld [vmem:[%s242_s1] sm:$0x3]  ;;  %v17_v2 = vld [vmem:[%s241_s0 + $0x10] sm:$0xff]  ;;  %v16_v3 = vld [vmem:[%s241_s0 + $0x8] sm:$0xff] }
   0x2   :  { %v15_v1 = vld [vmem:[%s241_s0] sm:$0xff]  ;;  %162 = vmatprep.subr.msk.mxu0 %vm40_vm0, %v19_v0  ;;  %170 = vmatprep.subr.msk.mxu1 %vm40_vm0, %v19_v0  ;;  %v18_v4 = vld [vmem:[%s241_s0 + $0x18] sm:$0x3f] }
   0x3   :  { %8 = vsyncpa [#allocation3], 0  ;;  %163 = vmatpush3.msk.msra.mxu0 %vm40_vm0, %v19_v0  ;;  %171 = vmatpush3.msk.msra.mxu1 %vm40_vm0, %v19_v0  ;;  %v151_v5 = vld [vmem:[%s243_s2] ss:$0 sm:$0xff]  ;;  %s197_s23 = smov [#allocation2]   ;;  %vm129_vm2 = vcmask 523264  }
   0x4   :  { %164 = vmatprep.mubr.msk.f32.mxu0 %vm27_vm1, %v15_v1  ;;  %167 = vmatprep.mubr.msk.f32.mxu1 %vm27_vm1, %v17_v2  ;;  %s140_s24 = sshll.u32 %s197_s23, 4  ;;  %vm133_vm3 = vcmask 521216   ;;  %s141_s24 = int_to_ptr.vmem [resolvable:$true] %s140_s24 }
   0x5   :  { %165 = vmatmul.mubr.msk.f32.vlgmr.msra.gmra.mxu0 %vm27_vm1, %v16_v3  ;;  %168 = vmatmul.mubr.msk.f32.vlgmr.msra.gmra.mxu1 %vm27_vm1, %v18_v4  ;;  %s175_s0 = scalar_lea.vmem %s141_s24, 512  ;;  %p180_p1 = scmp.lt.s32.totalorder %s141_s24, %s141_s24 }
   0x6   :  { %p176_p0 = scmp.ne.s32.totalorder %s141_s24, %s175_s0  ;;  %p181_p2 = scmp.lt.s32.totalorder %s175_s0, %s175_s0 }
   0x8   :  { %p182_p3 = por %p181_p2, %p180_p1 }
   0xa   :  { %p183_p4 = pnand %p182_p3, %p176_p0 }
  0xc5   :  { %v166_v6 = vpop.f32.mrf.mxu0  ;;  %v169_v7 = vpop.f32.mrf.mxu1 }
  0xc6   :  { %v116_v8 = vadd.f32 %v166_v6, %v151_v5  ;;  %v126_v9 = vadd.f32 %v169_v7, %v151_v5 }
  0xc7   :  { %v110_v10 = vpop.f32.mrf.mxu0  ;;  %v120_v11 = vpop.f32.mrf.mxu1 }
  0xc8   :  { %131 = vst.msk [vmem:[#allocation2 + $0x8] sm:$0xff] %vm129_vm2, %v116_v8  ;;  %v111_v12 = vadd.f32 %v151_v5, %v110_v10  ;;  %v121_v13 = vadd.f32 %v151_v5, %v120_v11 }
  0xc9   :  { %134 = vst.msk [vmem:[#allocation2 + $0x18] sm:$0x3f] %vm133_vm3, %v126_v9 }
  0xca   :  { %130 = vst.msk [vmem:[#allocation2] sm:$0xff] %vm129_vm2, %v111_v12  ;;  %132 = vst.msk [vmem:[#allocation2 + $0x10] sm:$0xff] %vm129_vm2, %v121_v13 }
  0xcb   :  { %186 = shalt.err (!%p183_p4)
}
  0xcc   :  { %s198_s2 = smov 128   ;;  %s199_s25 = smov 8  }
  0xcd   :  { %146 = dma.vmem_to_hbm [thread:$0]  %s141_s24, 512, %s244_s3, [#allocation3], %s198_s2, %s198_s2, %s199_s25  }
  0xce   :  { %195 = dma.done.wait [#allocation3], 512  }
  0xcf   :  { %196 = vsyncadd [#allocation3], 4294966784 }
  0xd0   :  { %150 = vsyncpa [#allocation3], 1 }

</bundles_post_ra>
